<compile_context>
chip_gen: v6e
topology: v6e:2x2x1
jax: 0.10.0
libtpu: 0.0.40
codegen_flags: <defaults>
</compile_context>

<pallas_src>
import math

import jax
import jax.numpy as jnp
from jax import lax
from jax.experimental import pallas as pl
from jax.experimental.pallas import tpu as pltpu

TEMPERATURE = 0.1
INF = 1.0e8          # matches the PyTorch module's self.INF
NEG_MASK = -1.0e9    # large finite mask value (avoid inf-inf -> NaN)
M_INIT = -1.0e30     # online-softmax running-max init (finite)


# --------------------------------------------------------------------------- #
# L2 row-normalization kernel (row-tiled, "parallel")
# --------------------------------------------------------------------------- #
def _l2norm_kernel(x_ref, o_ref):
    x = x_ref[...].astype(jnp.float32)
    # torch func.normalize(p=2, dim=-1): x / max(||x||, 1e-12) == x * rsqrt(max(sumsq, 1e-24))
    inv = lax.rsqrt(jnp.maximum(jnp.sum(x * x, axis=-1, keepdims=True), 1e-24))
    o_ref[...] = x * inv


def _l2_normalize(x, tm):
    n_pad, dp = x.shape
    return pl.pallas_call(
        _l2norm_kernel,
        out_shape=jax.ShapeDtypeStruct((n_pad, dp), jnp.float32),
        grid_spec=pltpu.PrefetchScalarGridSpec(
            num_scalar_prefetch=0,
            grid=(n_pad // tm,),
            in_specs=[pl.BlockSpec((tm, dp), lambda i: (i, 0))],
            out_specs=pl.BlockSpec((tm, dp), lambda i: (i, 0)),
        ),
        compiler_params=pltpu.CompilerParams(dimension_semantics=("parallel",)),
    )(x)


# --------------------------------------------------------------------------- #
# Tiled cross-entropy over cat([a @ b.T, masked(a @ a.T)]) / T, online LSE.
# Returns the per-row loss (lse - diag); mean is taken in the wrapper.
# --------------------------------------------------------------------------- #
def _make_ce_kernel(n_valid, inv_t, tm, tn, use_bf16):
    # NOTE: inv_t MUST be a plain Python float (a jnp scalar would be captured as a
    # kernel constant and rejected by pallas_call).
    n_valid = int(n_valid)
    inv_t = float(inv_t)
    tm = int(tm)
    tn = int(tn)

    def kernel(a_row_ref, b_col_ref, a_col_ref, b_row_ref, out_ref, m_sc, l_sc):
        k = pl.program_id(1)

        @pl.when(k == 0)
        def _init():
            m_sc[...] = jnp.full_like(m_sc, M_INIT)
            l_sc[...] = jnp.zeros_like(l_sc)

        a_row = a_row_ref[...]          # (tm, dp) f32, L2-normalized
        b_col = b_col_ref[...]          # (tn, dp)
        a_col = a_col_ref[...]          # (tn, dp)

        if use_bf16:                    # optional bf16 MXU inputs; accumulation stays f32
            a_mm = a_row.astype(jnp.bfloat16)
            b_mm = b_col.astype(jnp.bfloat16)
            aa_mm = a_col.astype(jnp.bfloat16)
        else:
            a_mm, b_mm, aa_mm = a_row, b_col, a_col

        # Contract the feature dims directly (no explicit transpose -> no XLU work).
        dnums = (((1,), (1,)), ((), ()))
        s_ab = lax.dot_general(a_mm, b_mm, dnums,
                               preferred_element_type=jnp.float32) * inv_t   # (tm, tn)
        s_aa = lax.dot_general(a_mm, aa_mm, dnums,
                               preferred_element_type=jnp.float32) * inv_t   # (tm, tn)

        row_ids = pl.program_id(0) * tm + lax.broadcasted_iota(jnp.int32, (tm, tn), 0)
        col_ids = k * tn + lax.broadcasted_iota(jnp.int32, (tm, tn), 1)
        col_ok = col_ids < n_valid
        s_ab = jnp.where(col_ok, s_ab, NEG_MASK)                          # mask pad columns
        s_aa = jnp.where(col_ok & (row_ids != col_ids), s_aa, NEG_MASK)   # mask diag + pad

        # Online log-sum-exp update across column tiles.
        m_prev = m_sc[...]
        m_new = jnp.maximum(
            m_prev,
            jnp.maximum(jnp.max(s_ab, axis=-1, keepdims=True),
                        jnp.max(s_aa, axis=-1, keepdims=True)))
        alpha = jnp.exp(m_prev - m_new)
        l_sc[...] = (alpha * l_sc[...]
                     + jnp.sum(jnp.exp(s_ab - m_new), axis=-1, keepdims=True)
                     + jnp.sum(jnp.exp(s_aa - m_new), axis=-1, keepdims=True))
        m_sc[...] = m_new

        @pl.when(k == pl.num_programs(1) - 1)
        def _finalize():
            # Correct-pair logit = per-row dot(a, b) / T (no NxN eye extraction).
            diag = jnp.sum(a_row * b_row_ref[...], axis=-1, keepdims=True) * inv_t
            out_ref[...] = (m_sc[...] + jnp.log(l_sc[...])) - diag

    return kernel


def _vmem_limit_bytes(tm, tn, dp):
    streamed = 2 * 4 * dp * (2 * tm + 2 * tn)   # 4 streamed f32 inputs, double-buffered
    sim = 8 * tm * tn * 4                       # s_ab/s_aa + exp temporaries (generous)
    small = 6 * tm * 4                          # out block + (m, l) scratch
    est = int(streamed + sim + small) + (8 << 20)   # headroom for compiler temps
    return max(est, 32 << 20)


def _ce_per_row(a, b, n_valid, temperature, tm, tn, use_bf16):
    """Per-row CE of cat([a @ b.T, masked(a @ a.T)]) / T. a, b are padded + normalized."""
    n_pad, dp = a.shape
    grid = (n_pad // tm, n_pad // tn)
    kernel = _make_ce_kernel(n_valid, 1.0 / float(temperature), tm, tn, use_bf16)
    cost = pl.CostEstimate(
        flops=4 * n_pad * n_pad * dp,            # two (n_pad x dp)@(dp x n_pad) matmuls
        transcendentals=2 * n_pad * n_pad,       # exp on both similarity blocks
        bytes_accessed=2 * n_pad * dp * 4 + n_pad * 4,
    )
    return pl.pallas_call(
        kernel,
        out_shape=jax.ShapeDtypeStruct((n_pad, 1), jnp.float32),
        grid_spec=pltpu.PrefetchScalarGridSpec(
            num_scalar_prefetch=0,
            grid=grid,
            in_specs=[
                pl.BlockSpec((tm, dp), lambda i, k: (i, 0)),   # a: resident row block
                pl.BlockSpec((tn, dp), lambda i, k: (k, 0)),   # b: streamed column block
                pl.BlockSpec((tn, dp), lambda i, k: (k, 0)),   # a: streamed column block
                pl.BlockSpec((tm, dp), lambda i, k: (i, 0)),   # b: row block (diag only)
            ],
            out_specs=pl.BlockSpec((tm, 1), lambda i, k: (i, 0)),
            scratch_shapes=[pltpu.VMEM((tm, 1), jnp.float32),   # running max m
                            pltpu.VMEM((tm, 1), jnp.float32)],  # running sum l
        ),
        compiler_params=pltpu.CompilerParams(
            dimension_semantics=("parallel", "arbitrary"),
            vmem_limit_bytes=_vmem_limit_bytes(tm, tn, dp),
        ),
        cost_estimate=cost,
    )(a, b, a, b)


# --------------------------------------------------------------------------- #
# Public wrapper: NT-Xent loss = loss_i + loss_j
# --------------------------------------------------------------------------- #
def _round_up(x, m):
    return ((x + m - 1) // m) * m


def ntxent_loss(z_i, z_j, *, temperature=TEMPERATURE, tm=128, tn=128,
                use_bf16_matmul=False):
    n, d = z_i.shape
    assert z_j.shape == (n, d)
    dp = _round_up(d, 128)                       # lane-dense feature dim
    n_pad = _round_up(n, math.lcm(tm, tn))       # rows tile cleanly for both tm and tn

    def pad(x):
        return jnp.pad(x.astype(jnp.float32), ((0, n_pad - n), (0, dp - d)))

    zi_n = _l2_normalize(pad(z_i), tm)           # normalize once, reuse for both terms
    zj_n = _l2_normalize(pad(z_j), tm)

    # loss_j == loss_i with (z_i, z_j) swapped -> same tiled kernel, two invocations.
    per_row_i = _ce_per_row(zi_n, zj_n, n, temperature, tm, tn, use_bf16_matmul)
    per_row_j = _ce_per_row(zj_n, zi_n, n, temperature, tm, tn, use_bf16_matmul)

    loss_i = jnp.mean(per_row_i[:n, 0])
    loss_j = jnp.mean(per_row_j[:n, 0])
    return loss_i + loss_j


# --------------------------------------------------------------------------- #
# Pure-JAX reference mirroring the PyTorch forward (for verification)
# --------------------------------------------------------------------------- #
def ntxent_reference(z_i, z_j, temperature=TEMPERATURE, inf=INF):
    zi = z_i / jnp.maximum(jnp.linalg.norm(z_i, axis=-1, keepdims=True), 1e-12)
    zj = z_j / jnp.maximum(jnp.linalg.norm(z_j, axis=-1, keepdims=True), 1e-12)
    n = zi.shape[0]
    sim_ij = zi @ zj.T / temperature
    sim_ii = zi @ zi.T / temperature - inf * jnp.eye(n)
    sim_jj = zj @ zj.T / temperature - inf * jnp.eye(n)
    idx = jnp.arange(n)

    def ce(logits):
        lse = jax.scipy.special.logsumexp(logits, axis=-1)
        return jnp.mean(lse - logits[idx, idx])

    loss_i = ce(jnp.concatenate([sim_ij, sim_ii], axis=1))
    loss_j = ce(jnp.concatenate([sim_ij.T, sim_jj], axis=1))
    return loss_i + loss_j


if __name__ == "__main__":
    # Small shapes; N is NOT a multiple of the tile and D is NOT a multiple of 128,
    # so both the row-padding mask and the lane padding paths are exercised.
    N, D = 72, 48
    key = jax.random.PRNGKey(0)
    k1, k2 = jax.random.split(key)
    z_i = jax.random.normal(k1, (N, D), dtype=jnp.float32)
    z_j = jax.random.normal(k2, (N, D), dtype=jnp.float32)

    # Small tiles so the (row, col) grid has multiple steps even at this toy size.
    loss = jax.block_until_ready(ntxent_loss(z_i, z_j, tm=32, tn=32))
    ref = jax.block_until_ready(ntxent_reference(z_i, z_j))

    assert jnp.isfinite(loss), "kernel produced non-finite loss"
    assert jnp.allclose(loss, ref, rtol=1e-4, atol=1e-4), (loss, ref)
    print("KERNEL_OK")
</pallas_src>

<mosaic_0001>
module attributes {stable_mosaic.version = 11 : i64} {
  func.func @_l2norm_kernel(%arg0: i32, %arg1: memref<32x128xf32, #tpu.memory_space<vmem>>, %arg2: memref<32x128xf32, #tpu.memory_space<vmem>>) attributes {dimension_semantics = [#tpu.dimension_semantics<parallel>], iteration_bounds = array<i64: 3>, scalar_prefetch = 0 : i64, scratch_operands = 0 : i64, tpu.core_type = #tpu.core_type<tc>, window_params = [{transform_indices = @transform_0, window_bounds = array<i64: 32, 128>}, {transform_indices = @transform_1, window_bounds = array<i64: 32, 128>}]} {
    %c0 = arith.constant 0 : index
    %c0_0 = arith.constant 0 : index
    %0 = vector.load %arg1[%c0, %c0_0] : memref<32x128xf32, #tpu.memory_space<vmem>>, vector<32x128xf32>
    %1 = arith.mulf %0, %0 : vector<32x128xf32>
    %cst = arith.constant dense<0.000000e+00> : vector<32xf32>
    %2 = vector.multi_reduction <add>, %1, %cst [1] : vector<32x128xf32> to vector<32xf32>
    %3 = vector.shape_cast %2 : vector<32xf32> to vector<32x1xf32>
    %cst_1 = arith.constant 1.000000e-24 : f32
    %4 = vector.broadcast %cst_1 : f32 to vector<32x1xf32>
    %5 = arith.maximumf %3, %4 : vector<32x1xf32>
    %6 = math.rsqrt %5 : vector<32x1xf32>
    %7 = vector.broadcast %6 : vector<32x1xf32> to vector<32x128xf32>
    %8 = arith.mulf %0, %7 : vector<32x128xf32>
    %c0_2 = arith.constant 0 : index
    %c0_3 = arith.constant 0 : index
    %9 = vector.load %arg2[%c0_2, %c0_3] : memref<32x128xf32, #tpu.memory_space<vmem>>, vector<32x128xf32>
    tpu.vector_store %arg2[%c0_2, %c0_3], %8 {strides = array<i32>} : memref<32x128xf32, #tpu.memory_space<vmem>>, vector<32x128xf32>,
    return
  }
  func.func @transform_0(%arg0: i32) -> (i32, i32) {
    %c0_i32 = arith.constant 0 : i32
    %c0_i32_0 = arith.constant 0 : i32
    return %arg0, %c0_i32 : i32, i32
  }
  func.func @transform_1(%arg0: i32) -> (i32, i32) {
    %c0_i32 = arith.constant 0 : i32
    %c0_i32_0 = arith.constant 0 : i32
    return %arg0, %c0_i32 : i32, i32
  }
}

</mosaic_0001>

<bundles_post_ra>
// kernel: tpu_custom_call.1
= control target key start
LH: loop header
LB: loop body
LE: loop exit
PB: predicated region body
PF: predicated region fallthrough
CT: control target
= control target key end

     0   :  { %6 = vsyncpa [#allocation3], 0  ;;  %s596_s0 = inlined_call_operand.hbm [shape: f32[96,128], index: 0, kind: input, shape index: {}]   ;;  %s597_s1 = inlined_call_operand.hbm [shape: f32[96,128], index: 1, kind: output, shape index: {}]  }
   0x1   :  { %8 = vsyncpa [#allocation3 + $0x1], 0 }
   0x2   :  { %9 = vsyncpa [#allocation4], 0 }
   0x3   :  { %11 = vsyncpa [#allocation4 + $0x1], 0  ;;  %s440_s6 = smov 0   ;;  %s442_s7 = smov 0  }
   0x4   :  { %s444_s8 = smov 0   ;;  %s446_s9 = smov 0  }
   0x5 LB: > { %s461_s10 = sadd.s32 4294967295, %s422_s9   ;;  %s256_s11 = sadd.s32 4294967294, %s422_s9   ;;  %s422_s9 = sphi %s446_s9, %s611_s9   ;;  %s418_s8 = sphi %s444_s8, %s610_s8   ;;  %s414_s7 = sphi %s442_s7, %s609_s7   ;;  %s410_s6 = sphi %s440_s6, %s608_s6  }
   0x6   : > { %s465_s12 = sadd.s32 1, %s422_s9   ;;  %s24_s13 = sadd.s32 1, %s418_s8 }
   0x7   : > { %s21_s14 = ssub.s32 %s422_s9, %s465_s12  ;;  %p31_p0 = scmp.ne.s32.totalorder %s418_s8, %s414_s7 }
   0x8   : > { %p22_p1 = scmp.eq.s32.totalorder %s21_s14, 0  ;;  %p32_p2 = scmp.eq.s32.totalorder %s422_s9, 0 }
   0x9   : > { %p37_p3 = scmp.ne.s32.totalorder %s414_s7, %s410_s6  ;;  %p38_p4 = scmp.eq.s32.totalorder %s461_s10, 0 }
   0xa   : > { %s477_s15 = scalar_select %p22_p1, %s418_s8, %s24_s13  }
   0xb   : > { %p479_p5 = por %p32_p2, %p31_p0  ;;  %p483_p6 = por %p38_p4, %p37_p3 }
   0xc   : > { %p61_p7 = scmp.eq.s32.totalorder %s461_s10, 2  ;;  %p67_p8 = scmp.eq.s32.totalorder %s256_s11, 2 }
   0xd   : > { %s601_s17 = scalar_select %p483_p6, 1, 0 }
   0xe   : > { %p284_p9 = scmp.lt.s32.totalorder %s422_s9, 3  ;;  %p489_p10 = por %p61_p7, %p31_p0 }
   0xf   : > { %p493_p11 = por %p67_p8, %p37_p3  ;;  %s87_s20 = sand.u32 1, %s418_s8  }
  0x10   : > { %s602_s18 = scalar_select %p489_p10, 1, 0 }
  0x11   : > { %s603_s19 = scalar_select %p493_p11, 1, 0 }
  0x12   : > { %s270_s21 = sshll.u32 %s422_s9, 9  ;;  %s259_s22 = sshll.u32 %s87_s20, 5 }
  0x13   : > { %s502_s25 = scalar_lea.hbm %s596_s0, %s270_s21  ;;  %s91_s26 = scalar_lea.vmem [#allocation2], %s259_s22 }
  0x14   : > { %s98_s27 = sshll.u32 %s91_s26, 4  ;;  %p506_p12 = pnand %p284_p9, %p479_p5  ;;  %s510_s27 = int_to_ptr.vmem [resolvable:$true] %s98_s27 }
  0x15   : > { %s512_s29 = scalar_lea.sflag [#allocation3], %s87_s20  ;;  %s330_s30 = scalar_lea.hbm %s502_s25, 512 }
  0x16   : > { %p331_p13 = scmp.ne.s32.totalorder %s502_s25, %s330_s30  ;;  %p332_p0 = pneg %p506_p12 }
  0x17   : > { %s335_s4 = scalar_lea.hbm %s596_s0, 1536  ;;  %p336_p3 = scmp.lt.s32.totalorder %s502_s25, %s596_s0 }
  0x18   : > { %p333_p1 = pnand %p332_p0, %p331_p13  ;;  %p337_p4 = scmp.lt.s32.totalorder %s335_s4, %s330_s30 }
  0x1a   : > { %p334_p2 = pneg %p333_p1  ;;  %p338_p5 = por %p337_p4, %p336_p3 }
  0x1c   : > { %p339_p7 = pnand %p338_p5, %p334_p2 }
  0x1e   : > { %342 = shalt.err (!%p339_p7)
}
  0x1f   : > { %s343_s13 = scalar_lea.vmem %s510_s27, 512  ;;  %s424_s14 = smov [#allocation2]  }
  0x20   : > { %p344_p8 = scmp.ne.s32.totalorder %s510_s27, %s343_s13  ;;  %s348_s16 = sshll.u32 %s424_s14, 4  ;;  %s349_s16 = int_to_ptr.vmem [resolvable:$false] %s348_s16 }
  0x21   : > { %s350_s20 = scalar_lea.vmem %s349_s16, 1024  ;;  %p351_p1 = scmp.lt.s32.totalorder %s510_s27, %s349_s16 }
  0x22   : > { %p346_p9 = pnand %p344_p8, %p332_p0  ;;  %p352_p11 = scmp.lt.s32.totalorder %s350_s20, %s343_s13 }
  0x24   : > { %p347_p13 = pneg %p346_p9  ;;  %p353_p10 = por %p352_p11, %p351_p1 }
  0x26   : > { %p354_p6 = pnand %p353_p10, %p347_p13 }
  0x28   : > { %357 = shalt.err (!%p354_p6)
}
  0x29   : > { %s425_s21 = smov 128   ;;  %s426_s22 = smov 8  }
  0x2a   : > { %279 = dma.hbm_to_vmem [thread:$0]  (!%p506_p12), %s502_s25, 512, %s510_s27, %s512_s29, %s425_s21, %s425_s21, %s426_s22  }
  0x2b   : > { %p262_p0 = scmp.ge.s32.totalorder %s422_s9, 1  ;;  %p106_p2 = scmp.lt.s32.totalorder %s422_s9, 4 }
  0x2d   : > { %p107_p3 = pnand %p262_p0, %p106_p2 }
  0x2e   : > { %s536_s23 = sand.u32 (!%p107_p3), 1, %s414_s7   ;;  %p605_p6 = scmp.ne.s32.totalorder (!%p107_p3), %s601_s17, 0 }
  0x2f   : > { %110 = sbr.rel (%p107_p3) target bundleno = 231 (0xe7), region = 24  ;;  %s263_s24 = sshll.u32 (!%p107_p3), %s536_s23, 5 }
  0x30   : > { %s113_s26 = scalar_lea.sflag (!%p107_p3), [#allocation3], %s536_s23  ;;  %s116_s30 = scalar_lea.vmem (!%p107_p3), [#allocation2], %s263_s24 }
  0x34   : > { %401 = dma.done.wait (%p605_p6), %s113_s26, 512  }
  0x35   : > { %403 = vsyncadd (%p605_p6), %s113_s26, 4294966784  ;;  %v139_v0 = vld [vmem:[%s116_s30 + $0x10] sm:$0xff]  ;;  %v137_v1 = vld [vmem:[%s116_s30] sm:$0xff]  ;;  %s271_s17 = sshll.u32 %s461_s10, 9  ;;  %s134_s25 = scalar_lea.vmem [#allocation5], %s263_s24 }
  0x36   : > { %v140_v2 = vld [vmem:[%s116_s30 + $0x18] sm:$0xff]  ;;  %v143_v3 = vmul.f32 %v139_v0, %v139_v0  ;;  %v141_v4 = vmul.f32 %v137_v1, %v137_v1  ;;  %v138_v5 = vld [vmem:[%s116_s30 + $0x8] sm:$0xff]  ;;  %s183_s27 = sshll.u32 %s134_s25, 4  ;;  %s552_s2 = scalar_lea.hbm %s597_s1, %s271_s17  ;;  %s554_s27 = int_to_ptr.vmem [resolvable:$true] %s183_s27 }
  0x37   : > { %v144_v6 = vmul.f32 %v140_v2, %v140_v2  ;;  %v142_v7 = vmul.f32 %v138_v5, %v138_v5  ;;  %s170_s10 = scalar_lea.sflag [#allocation4], %s536_s23  ;;  %s358_s3 = scalar_lea.vmem %s554_s27, 512 }
  0x38   : > { %149 = vadd.xlane.f32.xlu1 %v143_v3  ;;  %145 = vadd.xlane.f32.xlu0 %v141_v4  ;;  %p359_p10 = scmp.ne.s32.totalorder %s554_s27, %s358_s3  ;;  %p606_p11 = scmp.ne.s32.totalorder %s602_s18, 0 }
  0x39   : > { %s427_s4 = smov [#allocation5]  }
  0x3a   : > { %p360_p12 = pnand %p359_p10, %p606_p11  ;;  %s362_s5 = sshll.u32 %s427_s4, 4  ;;  %s363_s5 = int_to_ptr.vmem [resolvable:$false] %s362_s5 }
  0x3b   : > { %s364_s11 = scalar_lea.vmem %s363_s5, 1024  ;;  %p365_p5 = scmp.lt.s32.totalorder %s554_s27, %s363_s5 }
  0x3c   : > { %151 = vadd.xlane.f32.xlu1 %v144_v6  ;;  %147 = vadd.xlane.f32.xlu0 %v142_v7  ;;  %p361_p4 = pneg %p360_p12  ;;  %p366_p7 = scmp.lt.s32.totalorder %s364_s11, %s358_s3 }
  0x3e   : > { %p367_p8 = por %p366_p7, %p365_p5 }
  0x40   : > { %p368_p9 = pnand %p367_p8, %p361_p4 }
  0xc1   : > { %v150_v8 = vpop.xlane.xlu1 %149  ;;  %v146_v9 = vpop.xlane.xlu0 %145 }
  0xc2   : > { %v155_v10 = vmax.f32 %v150_v8, 1e-24  ;;  %v153_v11 = vmax.f32 %v146_v9, 1e-24 }
  0xc4   : > { %322 = vrsqrt.f32 %v155_v10 }
  0xc5   : > { %324 = vrsqrt.f32 %v153_v11  ;;  %v152_v12 = vpop.xlane.xlu1 %151  ;;  %v148_v13 = vpop.xlane.xlu0 %147 }
  0xc6   : > { %v156_v14 = vmax.f32 %v152_v12, 1e-24  ;;  %v154_v15 = vmax.f32 %v148_v13, 1e-24 }
  0xc8   : > { %326 = vrsqrt.f32 %v156_v14 }
  0xc9   : > { %328 = vrsqrt.f32 %v154_v15 }
  0xd1   : > { %v323_v16 = vpop.eup %322 }
  0xd2   : > { %v325_v17 = vpop.eup %324  ;;  %v163_v18 = vmul.f32 %v323_v16, %v139_v0 }
  0xd3   : > { %v161_v19 = vmul.f32 %v325_v17, %v137_v1 }
  0xd4   : > { %167 = vst [vmem:[%s134_s25 + $0x10] sm:$0xff] %v163_v18 }
  0xd5   : > { %v327_v20 = vpop.eup %326  ;;  %165 = vst [vmem:[%s134_s25] sm:$0xff] %v161_v19 }
  0xd6   : > { %v329_v21 = vpop.eup %328  ;;  %v164_v22 = vmul.f32 %v327_v20, %v140_v2 }
  0xd7   : > { %v162_v23 = vmul.f32 %v329_v21, %v138_v5 }
  0xd8   : > { %168 = vst [vmem:[%s134_s25 + $0x18] sm:$0xff] %v164_v22 }
  0xd9   : > { %166 = vst [vmem:[%s134_s25 + $0x8] sm:$0xff] %v162_v23 }
  0xda   : > { %371 = shalt.err (!%p368_p9)
}
  0xdb   : > { %s372_s13 = scalar_lea.hbm %s552_s2, 512  ;;  %s376_s20 = scalar_lea.hbm %s597_s1, 1536 }
  0xdc   : > { %p373_p13 = scmp.ne.s32.totalorder %s552_s2, %s372_s13  ;;  %p377_p2 = scmp.lt.s32.totalorder %s552_s2, %s597_s1 }
  0xdd   : > { %p378_p3 = scmp.lt.s32.totalorder %s376_s20, %s372_s13 }
  0xde   : > { %p374_p1 = pnand %p373_p13, %p606_p11 }
  0xdf   : > { %p379_p6 = por %p378_p3, %p377_p2 }
  0xe0   : > { %p375_p0 = pneg %p374_p1 }
  0xe2   : > { %p380_p10 = pnand %p379_p6, %p375_p0 }
  0xe4   : > { %383 = shalt.err (!%p380_p10)
}
  0xe5   : > { %s428_s24 = smov 128   ;;  %s429_s26 = smov 8  }
  0xe6   : > { %274 = dma.vmem_to_hbm [thread:$0]  (%p606_p11), %s554_s27, 512, %s552_s2, %s170_s10, %s428_s24, %s428_s24, %s429_s26  }
  0xe7 PF: > { %p285_p12 = scmp.ge.s32.totalorder %s422_s9, 2  ;;  %s198_s30 = sand.u32 1, %s410_s6  }
  0xe8   : > { %p607_p4 = scmp.ne.s32.totalorder %s603_s19, 0  ;;  %s199_s17 = scalar_lea.sflag [#allocation4], %s198_s30 }
  0xea   : > { %p281_p5 = pnand %p285_p12, %p607_p4 }
  0xec   : > { %p282_p7 = pneg %p281_p5 }
  0xee   : > { %405 = dma.done.wait (%p282_p7), %s199_s17, 512  }
  0xef   : > { %407 = vsyncadd (%p282_p7), %s199_s17, 4294966784  ;;  %p14_p8 = scmp.ge.s32.totalorder %s465_s12, 5   ;;  %s608_s6 = smov %s414_s7 }
  0xf0   : > { %s609_s7 = smov %s418_s8  ;;  %s610_s8 = smov %s477_s15 }
  0xf1   : > { %s611_s9 = smov %s465_s12  ;;  %16 = sbr.rel (!%p14_p8) target bundleno = 5 (0x5), region = 69 }
  0xf6   :  { %204 = vsyncpa [#allocation3], 1 }
  0xf7   :  { %206 = vsyncpa [#allocation3 + $0x1], 1 }
  0xf8   :  { %207 = vsyncpa [#allocation4], 1 }
  0xf9   :  { %209 = vsyncpa [#allocation4 + $0x1], 1 }

</bundles_post_ra>
